<compile_context>
chip_gen: v6e
topology: v6e:2x2x1
jax: 0.10.0
libtpu: 0.0.40
codegen_flags: <defaults>
</compile_context>

<pallas_src>
import functools

import jax
import jax.numpy as jnp
from jax import lax
from jax.experimental import pallas as pl
from jax.experimental.pallas import tpu as pltpu

CLASS_NUM = 5    # forced by np.array([0.0]*5) in the reference forward
C_PAD = 128      # class dim padded to a full 128-lane vreg
NEG_LARGE = -1e30  # "minus infinity" that avoids inf-inf arithmetic


def embedding_bag_softmax_kernel(idx_ref, emb_ref, out_ref, *, inv_batch, class_num):
    """Per-sample bag gather-sum + 1/batch scale + masked stable softmax.

    idx_ref : (B, L) int32, SMEM (scalar-prefetch)
    emb_ref : (V, C_PAD) f32, VMEM (class dim zero-padded to 128 lanes)
    out_ref : (B, C_PAD) f32, VMEM (caller slices [:, :class_num])
    """
    B, L = idx_ref.shape

    # Lane mask for the real classes inside the 128-lane padded row.
    lane = lax.broadcasted_iota(jnp.int32, (1, C_PAD), 1)
    valid = lane < class_num

    for b in range(B):  # B is small & static -> unrolled at trace time
        def gather_add(j, acc):
            w = idx_ref[b, j]                       # scalar index read from SMEM
            return acc + emb_ref[pl.ds(w, 1), :]    # dynamic (1, 128) row gather
            # TODO(synk): like the one-hot version, out-of-range indices are not
            # range-checked here (nn.Embedding would raise); inputs are assumed valid.

        row = lax.fori_loop(0, L, gather_add,
                            jnp.zeros((1, C_PAD), jnp.float32),
                            unroll=True)

        scaled = row * inv_batch
        scaled = jnp.where(valid, scaled, NEG_LARGE)      # keep padded lanes out of softmax
        m = jnp.max(scaled, axis=-1, keepdims=True)
        e = jnp.exp(scaled - m)                           # padded lanes -> exp(-1e30) == 0
        denom = jnp.sum(e, axis=-1, keepdims=True)
        # EUP reciprocal (separate VLIW slot) instead of a VPU divide.
        out_ref[pl.ds(b, 1), :] = e * pl.reciprocal(denom, approx=True)


def my_embedding_forward(word_indices, emb_table):
    B, L = word_indices.shape
    V, C = emb_table.shape

    # The module scales by 1/batch_size; use the actual number of samples.
    inv_batch = 1.0 / float(B)

    # Pad the class dim from C (=5) to 128 lanes so every VMEM access is lane-dense.
    emb_padded = jnp.zeros((V, C_PAD), emb_table.dtype).at[:, :C].set(emb_table)

    kernel = functools.partial(embedding_bag_softmax_kernel,
                               inv_batch=inv_batch, class_num=C)

    out_padded = pl.pallas_call(
        kernel,
        out_shape=jax.ShapeDtypeStruct((B, C_PAD), jnp.float32),
        grid_spec=pltpu.PrefetchScalarGridSpec(
            num_scalar_prefetch=1,          # word_indices -> SMEM, fed to index_maps too
            grid=(1,),
            # TODO(synk): for a real vocab, add a grid axis over V (reduction axis,
            # "arbitrary") with a (B, C_PAD) f32 accumulator in scratch_shapes and a
            # V-tile sized for v7x's 64 MiB VMEM (double-buffered); at V=128 the whole
            # table fits in one block, and the kernel is launch-overhead bound anyway.
            in_specs=[pl.BlockSpec((V, C_PAD), lambda i, idx: (0, 0))],
            out_specs=pl.BlockSpec((B, C_PAD), lambda i, idx: (0, 0)),
        ),
        compiler_params=pltpu.CompilerParams(
            dimension_semantics=("arbitrary",)),
    )(word_indices.astype(jnp.int32), emb_padded)

    return out_padded[:, :C]


def reference_forward(word_indices, emb_table):
    """Pure-JAX reference mirroring the PyTorch semantics."""
    B = word_indices.shape[0]
    summed = emb_table[word_indices].sum(axis=1)          # (B, C)
    scaled = summed * (1.0 / B)
    m = jnp.max(scaled, axis=-1, keepdims=True)
    e = jnp.exp(scaled - m)
    return e / jnp.sum(e, axis=-1, keepdims=True)


if __name__ == "__main__":
    key = jax.random.PRNGKey(0)
    k_emb, k_idx = jax.random.split(key)

    VOCAB = 128   # vocab_dim
    B, L = 4, 8   # 4 samples, 8 word indices each (each sample's `word_index` bag)

    # nn.Embedding default init: N(0, 1)
    emb_table = jax.random.normal(k_emb, (VOCAB, CLASS_NUM), dtype=jnp.float32)
    word_indices = jax.random.randint(k_idx, (B, L), 0, VOCAB, dtype=jnp.int32)

    out = my_embedding_forward(word_indices, emb_table)
    out = jax.block_until_ready(out)

    ref = reference_forward(word_indices, emb_table)
    assert out.shape == (B, CLASS_NUM)
    # Slightly looser tolerance because of the approximate EUP reciprocal.
    assert jnp.allclose(out, ref, atol=1e-3, rtol=1e-3)

    # TODO(synk): scale_grad_by_freq / sparse flags affect only the backward pass; no forward equivalent needed.
    print("KERNEL_OK")
</pallas_src>

<mosaic_0001>
module attributes {stable_mosaic.version = 11 : i64} {
  func.func @embedding_bag_softmax_kernel(%arg0: i32, %arg1: memref<4x8xi32, #tpu.memory_space<smem>>, %arg2: memref<128x128xf32, #tpu.memory_space<vmem>>, %arg3: memref<4x128xf32, #tpu.memory_space<vmem>>) attributes {dimension_semantics = [#tpu.dimension_semantics<arbitrary>], iteration_bounds = array<i64: 1>, scalar_prefetch = 1 : i64, scratch_operands = 0 : i64, tpu.core_type = #tpu.core_type<tc>, window_params = [{pipeline_mode = #tpu.pipeline_mode<synchronous>, transform_indices = @transform_0, window_bounds = array<i64: 128, 128>}, {pipeline_mode = #tpu.pipeline_mode<synchronous>, transform_indices = @transform_1, window_bounds = array<i64: 4, 128>}]} {
    %0 = tpu.iota {dimensions = array<i32: 1>} : vector<1x128xi32>
    %c5_i32 = arith.constant 5 : i32
    %1 = vector.broadcast %c5_i32 : i32 to vector<1x128xi32>
    %2 = arith.cmpi slt, %0, %1 : vector<1x128xi32>
    %cst = arith.constant 0.000000e+00 : f32
    %3 = vector.broadcast %cst : f32 to vector<1x128xf32>
    %c0_i32 = arith.constant 0 : i32
    %c0 = arith.constant 0 : index
    %4 = arith.index_cast %c0_i32 : i32 to index
    %5 = memref.load %arg1[%c0, %4] : memref<4x8xi32, #tpu.memory_space<smem>>
    %6 = arith.index_cast %5 : i32 to index
    %c0_0 = arith.constant 0 : index
    %7 = vector.load %arg2[%6, %c0_0] : memref<128x128xf32, #tpu.memory_space<vmem>>, vector<1x128xf32>
    %8 = arith.addf %3, %7 : vector<1x128xf32>
    %c1_i32 = arith.constant 1 : i32
    %c0_1 = arith.constant 0 : index
    %9 = arith.index_cast %c1_i32 : i32 to index
    %10 = memref.load %arg1[%c0_1, %9] : memref<4x8xi32, #tpu.memory_space<smem>>
    %11 = arith.index_cast %10 : i32 to index
    %c0_2 = arith.constant 0 : index
    %12 = vector.load %arg2[%11, %c0_2] : memref<128x128xf32, #tpu.memory_space<vmem>>, vector<1x128xf32>
    %13 = arith.addf %8, %12 : vector<1x128xf32>
    %c2_i32 = arith.constant 2 : i32
    %c0_3 = arith.constant 0 : index
    %14 = arith.index_cast %c2_i32 : i32 to index
    %15 = memref.load %arg1[%c0_3, %14] : memref<4x8xi32, #tpu.memory_space<smem>>
    %16 = arith.index_cast %15 : i32 to index
    %c0_4 = arith.constant 0 : index
    %17 = vector.load %arg2[%16, %c0_4] : memref<128x128xf32, #tpu.memory_space<vmem>>, vector<1x128xf32>
    %18 = arith.addf %13, %17 : vector<1x128xf32>
    %c3_i32 = arith.constant 3 : i32
    %c0_5 = arith.constant 0 : index
    %19 = arith.index_cast %c3_i32 : i32 to index
    %20 = memref.load %arg1[%c0_5, %19] : memref<4x8xi32, #tpu.memory_space<smem>>
    %21 = arith.index_cast %20 : i32 to index
    %c0_6 = arith.constant 0 : index
    %22 = vector.load %arg2[%21, %c0_6] : memref<128x128xf32, #tpu.memory_space<vmem>>, vector<1x128xf32>
    %23 = arith.addf %18, %22 : vector<1x128xf32>
    %c4_i32 = arith.constant 4 : i32
    %c0_7 = arith.constant 0 : index
    %24 = arith.index_cast %c4_i32 : i32 to index
    %25 = memref.load %arg1[%c0_7, %24] : memref<4x8xi32, #tpu.memory_space<smem>>
    %26 = arith.index_cast %25 : i32 to index
    %c0_8 = arith.constant 0 : index
    %27 = vector.load %arg2[%26, %c0_8] : memref<128x128xf32, #tpu.memory_space<vmem>>, vector<1x128xf32>
    %28 = arith.addf %23, %27 : vector<1x128xf32>
    %c5_i32_9 = arith.constant 5 : i32
    %c0_10 = arith.constant 0 : index
    %29 = arith.index_cast %c5_i32_9 : i32 to index
    %30 = memref.load %arg1[%c0_10, %29] : memref<4x8xi32, #tpu.memory_space<smem>>
    %31 = arith.index_cast %30 : i32 to index
    %c0_11 = arith.constant 0 : index
    %32 = vector.load %arg2[%31, %c0_11] : memref<128x128xf32, #tpu.memory_space<vmem>>, vector<1x128xf32>
    %33 = arith.addf %28, %32 : vector<1x128xf32>
    %c6_i32 = arith.constant 6 : i32
    %c0_12 = arith.constant 0 : index
    %34 = arith.index_cast %c6_i32 : i32 to index
    %35 = memref.load %arg1[%c0_12, %34] : memref<4x8xi32, #tpu.memory_space<smem>>
    %36 = arith.index_cast %35 : i32 to index
    %c0_13 = arith.constant 0 : index
    %37 = vector.load %arg2[%36, %c0_13] : memref<128x128xf32, #tpu.memory_space<vmem>>, vector<1x128xf32>
    %38 = arith.addf %33, %37 : vector<1x128xf32>
    %c7_i32 = arith.constant 7 : i32
    %c0_14 = arith.constant 0 : index
    %39 = arith.index_cast %c7_i32 : i32 to index
    %40 = memref.load %arg1[%c0_14, %39] : memref<4x8xi32, #tpu.memory_space<smem>>
    %41 = arith.index_cast %40 : i32 to index
    %c0_15 = arith.constant 0 : index
    %42 = vector.load %arg2[%41, %c0_15] : memref<128x128xf32, #tpu.memory_space<vmem>>, vector<1x128xf32>
    %43 = arith.addf %38, %42 : vector<1x128xf32>
    %c8_i32 = arith.constant 8 : i32
    %cst_16 = arith.constant 2.500000e-01 : f32
    %44 = vector.broadcast %cst_16 : f32 to vector<1x128xf32>
    %45 = arith.mulf %43, %44 : vector<1x128xf32>
    %cst_17 = arith.constant -1.000000e+30 : f32
    %46 = vector.broadcast %cst_17 : f32 to vector<1x128xf32>
    %47 = arith.select %2, %45, %46 : vector<1x128xi1>, vector<1x128xf32>
    %cst_18 = arith.constant dense<0xFF800000> : vector<1xf32>
    %48 = vector.multi_reduction <maximumf>, %47, %cst_18 [1] : vector<1x128xf32> to vector<1xf32>
    %49 = vector.shape_cast %48 : vector<1xf32> to vector<1x1xf32>
    %50 = vector.broadcast %49 : vector<1x1xf32> to vector<1x128xf32>
    %51 = arith.subf %47, %50 : vector<1x128xf32>
    %52 = math.exp %51 : vector<1x128xf32>
    %cst_19 = arith.constant dense<0.000000e+00> : vector<1xf32>
    %53 = vector.multi_reduction <add>, %52, %cst_19 [1] : vector<1x128xf32> to vector<1xf32>
    %54 = vector.shape_cast %53 : vector<1xf32> to vector<1x1xf32>
    %55 = tpu.reciprocal %54 {approx = true} : vector<1x1xf32> -> vector<1x1xf32>
    %56 = vector.broadcast %55 : vector<1x1xf32> to vector<1x128xf32>
    %57 = arith.mulf %52, %56 : vector<1x128xf32>
    %c0_20 = arith.constant 0 : index
    %c0_21 = arith.constant 0 : index
    %58 = vector.load %arg3[%c0_20, %c0_21] : memref<4x128xf32, #tpu.memory_space<vmem>>, vector<1x128xf32>
    tpu.vector_store %arg3[%c0_20, %c0_21], %57 {strides = array<i32>} : memref<4x128xf32, #tpu.memory_space<vmem>>, vector<1x128xf32>,
    %cst_22 = arith.constant 0.000000e+00 : f32
    %59 = vector.broadcast %cst_22 : f32 to vector<1x128xf32>
    %c0_i32_23 = arith.constant 0 : i32
    %c1 = arith.constant 1 : index
    %60 = arith.index_cast %c0_i32_23 : i32 to index
    %61 = memref.load %arg1[%c1, %60] : memref<4x8xi32, #tpu.memory_space<smem>>
    %62 = arith.index_cast %61 : i32 to index
    %c0_24 = arith.constant 0 : index
    %63 = vector.load %arg2[%62, %c0_24] : memref<128x128xf32, #tpu.memory_space<vmem>>, vector<1x128xf32>
    %64 = arith.addf %59, %63 : vector<1x128xf32>
    %c1_i32_25 = arith.constant 1 : i32
    %c1_26 = arith.constant 1 : index
    %65 = arith.index_cast %c1_i32_25 : i32 to index
    %66 = memref.load %arg1[%c1_26, %65] : memref<4x8xi32, #tpu.memory_space<smem>>
    %67 = arith.index_cast %66 : i32 to index
    %c0_27 = arith.constant 0 : index
    %68 = vector.load %arg2[%67, %c0_27] : memref<128x128xf32, #tpu.memory_space<vmem>>, vector<1x128xf32>
    %69 = arith.addf %64, %68 : vector<1x128xf32>
    %c2_i32_28 = arith.constant 2 : i32
    %c1_29 = arith.constant 1 : index
    %70 = arith.index_cast %c2_i32_28 : i32 to index
    %71 = memref.load %arg1[%c1_29, %70] : memref<4x8xi32, #tpu.memory_space<smem>>
    %72 = arith.index_cast %71 : i32 to index
    %c0_30 = arith.constant 0 : index
    %73 = vector.load %arg2[%72, %c0_30] : memref<128x128xf32, #tpu.memory_space<vmem>>, vector<1x128xf32>
    %74 = arith.addf %69, %73 : vector<1x128xf32>
    %c3_i32_31 = arith.constant 3 : i32
    %c1_32 = arith.constant 1 : index
    %75 = arith.index_cast %c3_i32_31 : i32 to index
    %76 = memref.load %arg1[%c1_32, %75] : memref<4x8xi32, #tpu.memory_space<smem>>
    %77 = arith.index_cast %76 : i32 to index
    %c0_33 = arith.constant 0 : index
    %78 = vector.load %arg2[%77, %c0_33] : memref<128x128xf32, #tpu.memory_space<vmem>>, vector<1x128xf32>
    %79 = arith.addf %74, %78 : vector<1x128xf32>
    %c4_i32_34 = arith.constant 4 : i32
    %c1_35 = arith.constant 1 : index
    %80 = arith.index_cast %c4_i32_34 : i32 to index
    %81 = memref.load %arg1[%c1_35, %80] : memref<4x8xi32, #tpu.memory_space<smem>>
    %82 = arith.index_cast %81 : i32 to index
    %c0_36 = arith.constant 0 : index
    %83 = vector.load %arg2[%82, %c0_36] : memref<128x128xf32, #tpu.memory_space<vmem>>, vector<1x128xf32>
    %84 = arith.addf %79, %83 : vector<1x128xf32>
    %c5_i32_37 = arith.constant 5 : i32
    %c1_38 = arith.constant 1 : index
    %85 = arith.index_cast %c5_i32_37 : i32 to index
    %86 = memref.load %arg1[%c1_38, %85] : memref<4x8xi32, #tpu.memory_space<smem>>
    %87 = arith.index_cast %86 : i32 to index
    %c0_39 = arith.constant 0 : index
    %88 = vector.load %arg2[%87, %c0_39] : memref<128x128xf32, #tpu.memory_space<vmem>>, vector<1x128xf32>
    %89 = arith.addf %84, %88 : vector<1x128xf32>
    %c6_i32_40 = arith.constant 6 : i32
    %c1_41 = arith.constant 1 : index
    %90 = arith.index_cast %c6_i32_40 : i32 to index
    %91 = memref.load %arg1[%c1_41, %90] : memref<4x8xi32, #tpu.memory_space<smem>>
    %92 = arith.index_cast %91 : i32 to index
    %c0_42 = arith.constant 0 : index
    %93 = vector.load %arg2[%92, %c0_42] : memref<128x128xf32, #tpu.memory_space<vmem>>, vector<1x128xf32>
    %94 = arith.addf %89, %93 : vector<1x128xf32>
    %c7_i32_43 = arith.constant 7 : i32
    %c1_44 = arith.constant 1 : index
    %95 = arith.index_cast %c7_i32_43 : i32 to index
    %96 = memref.load %arg1[%c1_44, %95] : memref<4x8xi32, #tpu.memory_space<smem>>
    %97 = arith.index_cast %96 : i32 to index
    %c0_45 = arith.constant 0 : index
    %98 = vector.load %arg2[%97, %c0_45] : memref<128x128xf32, #tpu.memory_space<vmem>>, vector<1x128xf32>
    %99 = arith.addf %94, %98 : vector<1x128xf32>
    %c8_i32_46 = arith.constant 8 : i32
    %cst_47 = arith.constant 2.500000e-01 : f32
    %100 = vector.broadcast %cst_47 : f32 to vector<1x128xf32>
    %101 = arith.mulf %99, %100 : vector<1x128xf32>
    %cst_48 = arith.constant -1.000000e+30 : f32
    %102 = vector.broadcast %cst_48 : f32 to vector<1x128xf32>
    %103 = arith.select %2, %101, %102 : vector<1x128xi1>, vector<1x128xf32>
    %cst_49 = arith.constant dense<0xFF800000> : vector<1xf32>
    %104 = vector.multi_reduction <maximumf>, %103, %cst_49 [1] : vector<1x128xf32> to vector<1xf32>
    %105 = vector.shape_cast %104 : vector<1xf32> to vector<1x1xf32>
    %106 = vector.broadcast %105 : vector<1x1xf32> to vector<1x128xf32>
    %107 = arith.subf %103, %106 : vector<1x128xf32>
    %108 = math.exp %107 : vector<1x128xf32>
    %cst_50 = arith.constant dense<0.000000e+00> : vector<1xf32>
    %109 = vector.multi_reduction <add>, %108, %cst_50 [1] : vector<1x128xf32> to vector<1xf32>
    %110 = vector.shape_cast %109 : vector<1xf32> to vector<1x1xf32>
    %111 = tpu.reciprocal %110 {approx = true} : vector<1x1xf32> -> vector<1x1xf32>
    %112 = vector.broadcast %111 : vector<1x1xf32> to vector<1x128xf32>
    %113 = arith.mulf %108, %112 : vector<1x128xf32>
    %c1_51 = arith.constant 1 : index
    %c0_52 = arith.constant 0 : index
    %114 = vector.load %arg3[%c1_51, %c0_52] : memref<4x128xf32, #tpu.memory_space<vmem>>, vector<1x128xf32>
    tpu.vector_store %arg3[%c1_51, %c0_52], %113 {strides = array<i32>} : memref<4x128xf32, #tpu.memory_space<vmem>>, vector<1x128xf32>,
    %cst_53 = arith.constant 0.000000e+00 : f32
    %115 = vector.broadcast %cst_53 : f32 to vector<1x128xf32>
    %c0_i32_54 = arith.constant 0 : i32
    %c2 = arith.constant 2 : index
    %116 = arith.index_cast %c0_i32_54 : i32 to index
    %117 = memref.load %arg1[%c2, %116] : memref<4x8xi32, #tpu.memory_space<smem>>
    %118 = arith.index_cast %117 : i32 to index
    %c0_55 = arith.constant 0 : index
    %119 = vector.load %arg2[%118, %c0_55] : memref<128x128xf32, #tpu.memory_space<vmem>>, vector<1x128xf32>
    %120 = arith.addf %115, %119 : vector<1x128xf32>
    %c1_i32_56 = arith.constant 1 : i32
    %c2_57 = arith.constant 2 : index
    %121 = arith.index_cast %c1_i32_56 : i32 to index
    %122 = memref.load %arg1[%c2_57, %121] : memref<4x8xi32, #tpu.memory_space<smem>>
    %123 = arith.index_cast %122 : i32 to index
    %c0_58 = arith.constant 0 : index
    %124 = vector.load %arg2[%123, %c0_58] : memref<128x128xf32, #tpu.memory_space<vmem>>, vector<1x128xf32>
    %125 = arith.addf %120, %124 : vector<1x128xf32>
    %c2_i32_59 = arith.constant 2 : i32
    %c2_60 = arith.constant 2 : index
    %126 = arith.index_cast %c2_i32_59 : i32 to index
    %127 = memref.load %arg1[%c2_60, %126] : memref<4x8xi32, #tpu.memory_space<smem>>
    %128 = arith.index_cast %127 : i32 to index
    %c0_61 = arith.constant 0 : index
    %129 = vector.load %arg2[%128, %c0_61] : memref<128x128xf32, #tpu.memory_space<vmem>>, vector<1x128xf32>
    %130 = arith.addf %125, %129 : vector<1x128xf32>
    %c3_i32_62 = arith.constant 3 : i32
    %c2_63 = arith.constant 2 : index
    %131 = arith.index_cast %c3_i32_62 : i32 to index
    %132 = memref.load %arg1[%c2_63, %131] : memref<4x8xi32, #tpu.memory_space<smem>>
    %133 = arith.index_cast %132 : i32 to index
    %c0_64 = arith.constant 0 : index
    %134 = vector.load %arg2[%133, %c0_64] : memref<128x128xf32, #tpu.memory_space<vmem>>, vector<1x128xf32>
    %135 = arith.addf %130, %134 : vector<1x128xf32>
    %c4_i32_65 = arith.constant 4 : i32
    %c2_66 = arith.constant 2 : index
    %136 = arith.index_cast %c4_i32_65 : i32 to index
    %137 = memref.load %arg1[%c2_66, %136] : memref<4x8xi32, #tpu.memory_space<smem>>
    %138 = arith.index_cast %137 : i32 to index
    %c0_67 = arith.constant 0 : index
    %139 = vector.load %arg2[%138, %c0_67] : memref<128x128xf32, #tpu.memory_space<vmem>>, vector<1x128xf32>
    %140 = arith.addf %135, %139 : vector<1x128xf32>
    %c5_i32_68 = arith.constant 5 : i32
    %c2_69 = arith.constant 2 : index
    %141 = arith.index_cast %c5_i32_68 : i32 to index
    %142 = memref.load %arg1[%c2_69, %141] : memref<4x8xi32, #tpu.memory_space<smem>>
    %143 = arith.index_cast %142 : i32 to index
    %c0_70 = arith.constant 0 : index
    %144 = vector.load %arg2[%143, %c0_70] : memref<128x128xf32, #tpu.memory_space<vmem>>, vector<1x128xf32>
    %145 = arith.addf %140, %144 : vector<1x128xf32>
    %c6_i32_71 = arith.constant 6 : i32
    %c2_72 = arith.constant 2 : index
    %146 = arith.index_cast %c6_i32_71 : i32 to index
    %147 = memref.load %arg1[%c2_72, %146] : memref<4x8xi32, #tpu.memory_space<smem>>
    %148 = arith.index_cast %147 : i32 to index
    %c0_73 = arith.constant 0 : index
    %149 = vector.load %arg2[%148, %c0_73] : memref<128x128xf32, #tpu.memory_space<vmem>>, vector<1x128xf32>
    %150 = arith.addf %145, %149 : vector<1x128xf32>
    %c7_i32_74 = arith.constant 7 : i32
    %c2_75 = arith.constant 2 : index
    %151 = arith.index_cast %c7_i32_74 : i32 to index
    %152 = memref.load %arg1[%c2_75, %151] : memref<4x8xi32, #tpu.memory_space<smem>>
    %153 = arith.index_cast %152 : i32 to index
    %c0_76 = arith.constant 0 : index
    %154 = vector.load %arg2[%153, %c0_76] : memref<128x128xf32, #tpu.memory_space<vmem>>, vector<1x128xf32>
    %155 = arith.addf %150, %154 : vector<1x128xf32>
    %c8_i32_77 = arith.constant 8 : i32
    %cst_78 = arith.constant 2.500000e-01 : f32
    %156 = vector.broadcast %cst_78 : f32 to vector<1x128xf32>
    %157 = arith.mulf %155, %156 : vector<1x128xf32>
    %cst_79 = arith.constant -1.000000e+30 : f32
    %158 = vector.broadcast %cst_79 : f32 to vector<1x128xf32>
    %159 = arith.select %2, %157, %158 : vector<1x128xi1>, vector<1x128xf32>
    %cst_80 = arith.constant dense<0xFF800000> : vector<1xf32>
    %160 = vector.multi_reduction <maximumf>, %159, %cst_80 [1] : vector<1x128xf32> to vector<1xf32>
    %161 = vector.shape_cast %160 : vector<1xf32> to vector<1x1xf32>
    %162 = vector.broadcast %161 : vector<1x1xf32> to vector<1x128xf32>
    %163 = arith.subf %159, %162 : vector<1x128xf32>
    %164 = math.exp %163 : vector<1x128xf32>
    %cst_81 = arith.constant dense<0.000000e+00> : vector<1xf32>
    %165 = vector.multi_reduction <add>, %164, %cst_81 [1] : vector<1x128xf32> to vector<1xf32>
    %166 = vector.shape_cast %165 : vector<1xf32> to vector<1x1xf32>
    %167 = tpu.reciprocal %166 {approx = true} : vector<1x1xf32> -> vector<1x1xf32>
    %168 = vector.broadcast %167 : vector<1x1xf32> to vector<1x128xf32>
    %169 = arith.mulf %164, %168 : vector<1x128xf32>
    %c2_82 = arith.constant 2 : index
    %c0_83 = arith.constant 0 : index
    %170 = vector.load %arg3[%c2_82, %c0_83] : memref<4x128xf32, #tpu.memory_space<vmem>>, vector<1x128xf32>
    tpu.vector_store %arg3[%c2_82, %c0_83], %169 {strides = array<i32>} : memref<4x128xf32, #tpu.memory_space<vmem>>, vector<1x128xf32>,
    %cst_84 = arith.constant 0.000000e+00 : f32
    %171 = vector.broadcast %cst_84 : f32 to vector<1x128xf32>
    %c0_i32_85 = arith.constant 0 : i32
    %c3 = arith.constant 3 : index
    %172 = arith.index_cast %c0_i32_85 : i32 to index
    %173 = memref.load %arg1[%c3, %172] : memref<4x8xi32, #tpu.memory_space<smem>>
    %174 = arith.index_cast %173 : i32 to index
    %c0_86 = arith.constant 0 : index
    %175 = vector.load %arg2[%174, %c0_86] : memref<128x128xf32, #tpu.memory_space<vmem>>, vector<1x128xf32>
    %176 = arith.addf %171, %175 : vector<1x128xf32>
    %c1_i32_87 = arith.constant 1 : i32
    %c3_88 = arith.constant 3 : index
    %177 = arith.index_cast %c1_i32_87 : i32 to index
    %178 = memref.load %arg1[%c3_88, %177] : memref<4x8xi32, #tpu.memory_space<smem>>
    %179 = arith.index_cast %178 : i32 to index
    %c0_89 = arith.constant 0 : index
    %180 = vector.load %arg2[%179, %c0_89] : memref<128x128xf32, #tpu.memory_space<vmem>>, vector<1x128xf32>
    %181 = arith.addf %176, %180 : vector<1x128xf32>
    %c2_i32_90 = arith.constant 2 : i32
    %c3_91 = arith.constant 3 : index
    %182 = arith.index_cast %c2_i32_90 : i32 to index
    %183 = memref.load %arg1[%c3_91, %182] : memref<4x8xi32, #tpu.memory_space<smem>>
    %184 = arith.index_cast %183 : i32 to index
    %c0_92 = arith.constant 0 : index
    %185 = vector.load %arg2[%184, %c0_92] : memref<128x128xf32, #tpu.memory_space<vmem>>, vector<1x128xf32>
    %186 = arith.addf %181, %185 : vector<1x128xf32>
    %c3_i32_93 = arith.constant 3 : i32
    %c3_94 = arith.constant 3 : index
    %187 = arith.index_cast %c3_i32_93 : i32 to index
    %188 = memref.load %arg1[%c3_94, %187] : memref<4x8xi32, #tpu.memory_space<smem>>
    %189 = arith.index_cast %188 : i32 to index
    %c0_95 = arith.constant 0 : index
    %190 = vector.load %arg2[%189, %c0_95] : memref<128x128xf32, #tpu.memory_space<vmem>>, vector<1x128xf32>
    %191 = arith.addf %186, %190 : vector<1x128xf32>
    %c4_i32_96 = arith.constant 4 : i32
    %c3_97 = arith.constant 3 : index
    %192 = arith.index_cast %c4_i32_96 : i32 to index
    %193 = memref.load %arg1[%c3_97, %192] : memref<4x8xi32, #tpu.memory_space<smem>>
    %194 = arith.index_cast %193 : i32 to index
    %c0_98 = arith.constant 0 : index
    %195 = vector.load %arg2[%194, %c0_98] : memref<128x128xf32, #tpu.memory_space<vmem>>, vector<1x128xf32>
    %196 = arith.addf %191, %195 : vector<1x128xf32>
    %c5_i32_99 = arith.constant 5 : i32
    %c3_100 = arith.constant 3 : index
    %197 = arith.index_cast %c5_i32_99 : i32 to index
    %198 = memref.load %arg1[%c3_100, %197] : memref<4x8xi32, #tpu.memory_space<smem>>
    %199 = arith.index_cast %198 : i32 to index
    %c0_101 = arith.constant 0 : index
    %200 = vector.load %arg2[%199, %c0_101] : memref<128x128xf32, #tpu.memory_space<vmem>>, vector<1x128xf32>
    %201 = arith.addf %196, %200 : vector<1x128xf32>
    %c6_i32_102 = arith.constant 6 : i32
    %c3_103 = arith.constant 3 : index
    %202 = arith.index_cast %c6_i32_102 : i32 to index
    %203 = memref.load %arg1[%c3_103, %202] : memref<4x8xi32, #tpu.memory_space<smem>>
    %204 = arith.index_cast %203 : i32 to index
    %c0_104 = arith.constant 0 : index
    %205 = vector.load %arg2[%204, %c0_104] : memref<128x128xf32, #tpu.memory_space<vmem>>, vector<1x128xf32>
    %206 = arith.addf %201, %205 : vector<1x128xf32>
    %c7_i32_105 = arith.constant 7 : i32
    %c3_106 = arith.constant 3 : index
    %207 = arith.index_cast %c7_i32_105 : i32 to index
    %208 = memref.load %arg1[%c3_106, %207] : memref<4x8xi32, #tpu.memory_space<smem>>
    %209 = arith.index_cast %208 : i32 to index
    %c0_107 = arith.constant 0 : index
    %210 = vector.load %arg2[%209, %c0_107] : memref<128x128xf32, #tpu.memory_space<vmem>>, vector<1x128xf32>
    %211 = arith.addf %206, %210 : vector<1x128xf32>
    %c8_i32_108 = arith.constant 8 : i32
    %cst_109 = arith.constant 2.500000e-01 : f32
    %212 = vector.broadcast %cst_109 : f32 to vector<1x128xf32>
    %213 = arith.mulf %211, %212 : vector<1x128xf32>
    %cst_110 = arith.constant -1.000000e+30 : f32
    %214 = vector.broadcast %cst_110 : f32 to vector<1x128xf32>
    %215 = arith.select %2, %213, %214 : vector<1x128xi1>, vector<1x128xf32>
    %cst_111 = arith.constant dense<0xFF800000> : vector<1xf32>
    %216 = vector.multi_reduction <maximumf>, %215, %cst_111 [1] : vector<1x128xf32> to vector<1xf32>
    %217 = vector.shape_cast %216 : vector<1xf32> to vector<1x1xf32>
    %218 = vector.broadcast %217 : vector<1x1xf32> to vector<1x128xf32>
    %219 = arith.subf %215, %218 : vector<1x128xf32>
    %220 = math.exp %219 : vector<1x128xf32>
    %cst_112 = arith.constant dense<0.000000e+00> : vector<1xf32>
    %221 = vector.multi_reduction <add>, %220, %cst_112 [1] : vector<1x128xf32> to vector<1xf32>
    %222 = vector.shape_cast %221 : vector<1xf32> to vector<1x1xf32>
    %223 = tpu.reciprocal %222 {approx = true} : vector<1x1xf32> -> vector<1x1xf32>
    %224 = vector.broadcast %223 : vector<1x1xf32> to vector<1x128xf32>
    %225 = arith.mulf %220, %224 : vector<1x128xf32>
    %c3_113 = arith.constant 3 : index
    %c0_114 = arith.constant 0 : index
    %226 = vector.load %arg3[%c3_113, %c0_114] : memref<4x128xf32, #tpu.memory_space<vmem>>, vector<1x128xf32>
    tpu.vector_store %arg3[%c3_113, %c0_114], %225 {strides = array<i32>} : memref<4x128xf32, #tpu.memory_space<vmem>>, vector<1x128xf32>,
    return
  }
  func.func @transform_0(%arg0: i32, %arg1: memref<4x8xi32, #tpu.memory_space<smem>>) -> (i32, i32) {
    %c0_i32 = arith.constant 0 : i32
    %c0_i32_0 = arith.constant 0 : i32
    %c0_i32_1 = arith.constant 0 : i32
    return %c0_i32, %c0_i32_0 : i32, i32
  }
  func.func @transform_1(%arg0: i32, %arg1: memref<4x8xi32, #tpu.memory_space<smem>>) -> (i32, i32) {
    %c0_i32 = arith.constant 0 : i32
    %c0_i32_0 = arith.constant 0 : i32
    %c0_i32_1 = arith.constant 0 : i32
    return %c0_i32, %c0_i32_0 : i32, i32
  }
}

</mosaic_0001>

<bundles_post_ra>
// kernel: tpu_custom_call.1
= control target key start
LH: loop header
LB: loop body
LE: loop exit
PB: predicated region body
PF: predicated region fallthrough
CT: control target
= control target key end

     0   :  { %s369_s9 = smov [#allocation3]   ;;  %s472_s0 = inlined_call_operand.hbm [shape: s32[4,8], index: 0, kind: input, shape index: {}]   ;;  %s473_s1 = inlined_call_operand.hbm [shape: f32[128,128], index: 1, kind: input, shape index: {}]   ;;  %s474_s2 = inlined_call_operand.hbm [shape: f32[4,128], index: 2, kind: output, shape index: {}]  }
   0x1   :  { %8 = dma.hbm_to_smem %s472_s0, 64, %s369_s9, [#allocation2] }
   0x2   :  { %363 = dma.done.wait [#allocation2], 64 }
   0x3   :  { %364 = vsyncadd [#allocation2], 4294967232 }
   0x4   :  { %10 = sfence }
   0x5   :  { %11 = vsyncpa [#allocation5], 0 }
   0x6   :  { %12 = vsyncpa [#allocation6], 0  ;;  %s370_s12 = smov [#allocation4]  }
   0x7   :  { %s18_s13 = sshll.u32 %s370_s12, 4  ;;  %s19_s13 = int_to_ptr.vmem [resolvable:$true] %s18_s13 }
   0x8   :  { %s331_s14 = scalar_lea.vmem %s19_s13, 2048  ;;  %p336_p1 = scmp.lt.s32.totalorder %s19_s13, %s19_s13 }
   0x9   :  { %p332_p0 = scmp.ne.s32.totalorder %s19_s13, %s331_s14  ;;  %p337_p2 = scmp.lt.s32.totalorder %s331_s14, %s331_s14 }
   0xb   :  { %p338_p3 = por %p337_p2, %p336_p1 }
   0xd   :  { %p339_p4 = pnand %p338_p3, %p332_p0 }
   0xf   :  { %342 = shalt.err (!%p339_p4)
}
  0x10   :  { %s371_s15 = smov 128   ;;  %s372_s16 = smov 8  }
  0x11   :  { %24 = dma.hbm_to_vmem [thread:$0]  %s473_s1, 2048, %s19_s13, [#allocation5], %s371_s15, %s371_s15, %s372_s16  }
  0x12   :  { %365 = dma.done.wait [#allocation5], 2048  }
  0x13   :  { %366 = vsyncadd [#allocation5], 4294965248  ;;  %s31_s0 = sld [smem:[#allocation3]]  ;;  %v28_v9 = vlaneseq  ;;  %vm65_vm0 = vcmask 1040384  }
  0x14   :  { %s263_s19 = sld [smem:[#allocation3 + $0x1]] }
  0x15   :  { %s264_s20 = sld [smem:[#allocation3 + $0x2]]  ;;  %v410_v18 = vand.u32 127, %v28_v9 }
  0x16   :  { %s265_s21 = sld [smem:[#allocation3 + $0x3]] }
  0x17   :  { %s266_s22 = sld [smem:[#allocation3 + $0x4]]  ;;  %vm30_vm1 = vcmp.lt.s32.totalorder %v410_v18, 5 }
  0x18   :  { %s267_s23 = sld [smem:[#allocation3 + $0x5]] }
  0x19   :  { %s268_s24 = sld [smem:[#allocation3 + $0x6]]  ;;  %s32_s25 = scalar_lea.vmem [#allocation4], %s31_s0 }
  0x1a   :  { %v33_v0 = vld [vmem:[%s32_s25] sm:$0x1]  ;;  %s395_s26 = sld [smem:[#allocation3 + $0x7]]  ;;  %s36_s27 = scalar_lea.vmem [#allocation4], %s263_s19 }
  0x1b   :  { %v37_v1 = vld [vmem:[%s36_s27] sm:$0x1]  ;;  %s278_s28 = sld [smem:[#allocation3 + $0x100]]  ;;  %s40_s29 = scalar_lea.vmem [#allocation4], %s264_s20 }
  0x1c   :  { %v38_v2 = vadd.f32 %v37_v1, %v33_v0  ;;  %v41_v3 = vld [vmem:[%s40_s29] sm:$0x1]  ;;  %s279_s1 = sld [smem:[#allocation3 + $0x101]]  ;;  %s44_s30 = scalar_lea.vmem [#allocation4], %s265_s21 }
  0x1d   :  { %v45_v4 = vld [vmem:[%s44_s30] sm:$0x1]  ;;  %s280_s3 = sld [smem:[#allocation3 + $0x102]]  ;;  %s48_s5 = scalar_lea.vmem [#allocation4], %s266_s22 }
  0x1e   :  { %v42_v5 = vadd.f32 %v41_v3, %v38_v2  ;;  %s281_s4 = sld [smem:[#allocation3 + $0x103]]  ;;  %v49_v6 = vld [vmem:[%s48_s5] sm:$0x1]  ;;  %s52_s7 = scalar_lea.vmem [#allocation4], %s267_s23 }
  0x1f   :  { %s397_s6 = sld [smem:[#allocation3 + $0x104]]  ;;  %v53_v8 = vld [vmem:[%s52_s7] sm:$0x1]  ;;  %s56_s9 = scalar_lea.vmem [#allocation4], %s268_s24 }
  0x20   :  { %v46_v7 = vadd.f32 %v45_v4, %v42_v5  ;;  %s399_s8 = sld [smem:[#allocation3 + $0x105]]  ;;  %v57_v10 = vld [vmem:[%s56_s9] sm:$0x1]  ;;  %s60_s13 = scalar_lea.vmem [#allocation4], %s395_s26 }
  0x21   :  { %s401_s10 = sld [smem:[#allocation3 + $0x106]]  ;;  %s125_s11 = scalar_lea.vmem [#allocation4], %s278_s28  ;;  %v61_v13 = vld [vmem:[%s60_s13] sm:$0x1] }
  0x22   :  { %v50_v11 = vadd.f32 %v49_v6, %v46_v7  ;;  %v126_v12 = vld [vmem:[%s125_s11] sm:$0x1]  ;;  %s403_s12 = sld [smem:[#allocation3 + $0x107]]  ;;  %s129_s14 = scalar_lea.vmem [#allocation4], %s279_s1 }
  0x23   :  { %v130_v14 = vld [vmem:[%s129_s14] sm:$0x1]  ;;  %s406_s15 = sld [smem:[#allocation3 + $0x80]]  ;;  %s133_s16 = scalar_lea.vmem [#allocation4], %s280_s3 }
  0x24   :  { %v54_v15 = vadd.f32 %v53_v8, %v50_v11  ;;  %v131_v16 = vadd.f32 %v130_v14, %v126_v12  ;;  %v134_v17 = vld [vmem:[%s133_s16] sm:$0x1]  ;;  %s408_s17 = sld [smem:[#allocation3 + $0x81]]  ;;  %s137_s18 = scalar_lea.vmem [#allocation4], %s281_s4 }
  0x25   :  { %v138_v19 = vld [vmem:[%s137_s18] sm:$0x1]  ;;  %s412_s0 = sld [smem:[#allocation3 + $0x82]]  ;;  %s141_s20 = scalar_lea.vmem [#allocation4], %s397_s6 }
  0x26   :  { %v58_v20 = vadd.f32 %v57_v10, %v54_v15  ;;  %v135_v21 = vadd.f32 %v134_v17, %v131_v16  ;;  %s414_s19 = sld [smem:[#allocation3 + $0x83]]  ;;  %v142_v22 = vld [vmem:[%s141_s20] sm:$0x1]  ;;  %s145_s22 = scalar_lea.vmem [#allocation4], %s399_s8 }
  0x27   :  { %s417_s21 = sld [smem:[#allocation3 + $0x84]]  ;;  %v146_v25 = vld [vmem:[%s145_s22] sm:$0x1]  ;;  %s149_s24 = scalar_lea.vmem [#allocation4], %s401_s10 }
  0x28   :  { %v62_v23 = vadd.f32 %v61_v13, %v58_v20  ;;  %v139_v24 = vadd.f32 %v138_v19, %v135_v21  ;;  %s420_s23 = sld [smem:[#allocation3 + $0x85]]  ;;  %v150_v26 = vld [vmem:[%s149_s24] sm:$0x1]  ;;  %s153_s28 = scalar_lea.vmem [#allocation4], %s403_s12 }
  0x29   :  { %s424_s25 = sld [smem:[#allocation3 + $0x86]]  ;;  %s79_s26 = scalar_lea.vmem [#allocation4], %s406_s15  ;;  %v154_v30 = vld [vmem:[%s153_s28] sm:$0x1] }
  0x2a   :  { %v63_v27 = vmul.f32 0.25, %v62_v23  ;;  %v143_v28 = vadd.f32 %v142_v22, %v139_v24  ;;  %v80_v29 = vld [vmem:[%s79_s26] sm:$0x1]  ;;  %s427_s27 = sld [smem:[#allocation3 + $0x87]]  ;;  %s83_s29 = scalar_lea.vmem [#allocation4], %s408_s17 }
  0x2b   :  { %v84_v31 = vld [vmem:[%s83_s29] sm:$0x1]  ;;  %s286_s1 = sld [smem:[#allocation3 + $0x180]]  ;;  %s87_s30 = scalar_lea.vmem [#allocation4], %s412_s0 }
  0x2c   :  { %v433_v32 = vsel %vm30_vm1, %v63_v27, -1e+30  ;;  %v147_v33 = vadd.f32 %v146_v25, %v143_v28  ;;  %v85_v34 = vadd.f32 %v84_v31, %v80_v29  ;;  %v88_v35 = vld [vmem:[%s87_s30] sm:$0x1]  ;;  %s91_s3 = scalar_lea.vmem [#allocation4], %s414_s19  ;;  %s287_s4 = sld [smem:[#allocation3 + $0x181]] }
  0x2d   :  { %v66_v36 = vsel %vm65_vm0, %v433_v32, -inf  ;;  %v92_v37 = vld [vmem:[%s91_s3] sm:$0x1]  ;;  %s288_s5 = sld [smem:[#allocation3 + $0x182]]  ;;  %s95_s6 = scalar_lea.vmem [#allocation4], %s417_s21 }
  0x2e   :  { %67 = vmax.xlane.f32.xlu0 %v66_v36  ;;  %v151_v38 = vadd.f32 %v150_v26, %v147_v33  ;;  %v89_v39 = vadd.f32 %v88_v35, %v85_v34  ;;  %v96_v40 = vld [vmem:[%s95_s6] sm:$0x1]  ;;  %s289_s7 = sld [smem:[#allocation3 + $0x183]]  ;;  %s99_s9 = scalar_lea.vmem [#allocation4], %s420_s23 }
  0x2f   :  { %s440_s8 = sld [smem:[#allocation3 + $0x184]]  ;;  %v100_v43 = vld [vmem:[%s99_s9] sm:$0x1]  ;;  %s103_s13 = scalar_lea.vmem [#allocation4], %s424_s25 }
  0x30   :  { %v155_v41 = vadd.f32 %v154_v30, %v151_v38  ;;  %v93_v42 = vadd.f32 %v92_v37, %v89_v39  ;;  %s443_s10 = sld [smem:[#allocation3 + $0x185]]  ;;  %v104_v47 = vld [vmem:[%s103_s13] sm:$0x1]  ;;  %s107_s16 = scalar_lea.vmem [#allocation4], %s427_s27 }
  0x31   :  { %s171_s11 = scalar_lea.vmem [#allocation4], %s286_s1  ;;  %s445_s12 = sld [smem:[#allocation3 + $0x186]]  ;;  %v108_v52 = vld [vmem:[%s107_s16] sm:$0x1] }
  0x32   :  { %v156_v44 = vmul.f32 0.25, %v155_v41  ;;  %v97_v45 = vadd.f32 %v96_v40, %v93_v42  ;;  %v172_v46 = vld [vmem:[%s171_s11] sm:$0x1]  ;;  %s448_s14 = sld [smem:[#allocation3 + $0x187]]  ;;  %s175_s15 = scalar_lea.vmem [#allocation4], %s287_s4 }
  0x33   :  { %v176_v50 = vld [vmem:[%s175_s15] sm:$0x1]  ;;  %s179_s17 = scalar_lea.vmem [#allocation4], %s288_s5  ;;  %s373_s22 = smov [#allocation7]  }
  0x34   :  { %v157_v48 = vsel %vm30_vm1, %v156_v44, -1e+30  ;;  %v101_v49 = vadd.f32 %v100_v43, %v97_v45  ;;  %v177_v53 = vadd.f32 %v176_v50, %v172_v46  ;;  %v180_v54 = vld [vmem:[%s179_s17] sm:$0x1]  ;;  %s183_s18 = scalar_lea.vmem [#allocation4], %s289_s7  ;;  %s222_s23 = sshll.u32 %s373_s22, 4  ;;  %s223_s23 = int_to_ptr.vmem [resolvable:$true] %s222_s23 }
  0x35   :  { %v158_v51 = vsel %vm65_vm0, %v157_v48, -inf  ;;  %v184_v56 = vld [vmem:[%s183_s18] sm:$0x1]  ;;  %s187_s0 = scalar_lea.vmem [#allocation4], %s440_s8  ;;  %s343_s24 = scalar_lea.vmem %s223_s23, 64 }
  0x36   :  { %159 = vmax.xlane.f32.xlu1 %v158_v51  ;;  %v105_v55 = vadd.f32 %v104_v47, %v101_v49  ;;  %v181_v57 = vadd.f32 %v180_v54, %v177_v53  ;;  %v188_v59 = vld [vmem:[%s187_s0] sm:$0x1]  ;;  %s191_s19 = scalar_lea.vmem [#allocation4], %s443_s10  ;;  %p344_p5 = scmp.ne.s32.totalorder %s223_s23, %s343_s24 }
  0x37   :  { %v192_v62 = vld [vmem:[%s191_s19] sm:$0x1]  ;;  %s195_s20 = scalar_lea.vmem [#allocation4], %s445_s12  ;;  %p348_p6 = scmp.lt.s32.totalorder %s223_s23, %s223_s23 }
  0x38   :  { %v109_v58 = vadd.f32 %v108_v52, %v105_v55  ;;  %v185_v60 = vadd.f32 %v184_v56, %v181_v57  ;;  %v196_v1 = vld [vmem:[%s195_s20] sm:$0x1]  ;;  %s199_s21 = scalar_lea.vmem [#allocation4], %s448_s14  ;;  %p349_p7 = scmp.lt.s32.totalorder %s343_s24, %s343_s24 }
  0x39   :  { %v200_v4 = vld [vmem:[%s199_s21] sm:$0x1] }
  0x3a   :  { %v110_v61 = vmul.f32 0.25, %v109_v58  ;;  %v189_v63 = vadd.f32 %v188_v59, %v185_v60  ;;  %p350_p8 = por %p349_p7, %p348_p6 }
  0x3c   :  { %v111_v0 = vsel %vm30_vm1, %v110_v61, -1e+30  ;;  %v193_v3 = vadd.f32 %v192_v62, %v189_v63  ;;  %p351_p9 = pnand %p350_p8, %p344_p5 }
  0x3d   :  { %v112_v2 = vsel %vm65_vm0, %v111_v0, -inf }
  0x3e   :  { %113 = vmax.xlane.f32.xlu0 %v112_v2  ;;  %v197_v5 = vadd.f32 %v196_v1, %v193_v3 }
  0x40   :  { %v201_v6 = vadd.f32 %v200_v4, %v197_v5 }
  0x42   :  { %v202_v7 = vmul.f32 0.25, %v201_v6 }
  0x44   :  { %v203_v8 = vsel %vm30_vm1, %v202_v7, -1e+30 }
  0x45   :  { %v204_v9 = vsel %vm65_vm0, %v203_v8, -inf }
  0x46   :  { %205 = vmax.xlane.f32.xlu1 %v204_v9 }
  0xb7   :  { %v68_v10 = vpop.xlane.xlu0 %67 }
  0xb8   :  { %v69_v11 = vsub.f32 %v433_v32, %v68_v10 }
  0xba   :  { %v70_v12 = vmul.f32 1.442695, %v69_v11 }
  0xbc   :  { %299 = vpow2.f32 %v70_v12 }
  0xbf   :  { %v160_v13 = vpop.xlane.xlu1 %159 }
  0xc0   :  { %v161_v14 = vsub.f32 %v157_v48, %v160_v13 }
  0xc2   :  { %v162_v15 = vmul.f32 1.442695, %v161_v14 }
  0xc4   :  { %301 = vpow2.f32 %v162_v15 }
  0xc7   :  { %v114_v16 = vpop.xlane.xlu0 %113 }
  0xc8   :  { %v115_v17 = vsub.f32 %v111_v0, %v114_v16 }
  0xc9   :  { %v300_v19 = vpop.eup %299 }
  0xca   :  { %v116_v20 = vmul.f32 1.442695, %v115_v17  ;;  %v72_v21 = vsel %vm65_vm0, %v300_v19, 0.0 }
  0xcb   :  { %73 = vadd.xlane.f32.xlu0 %v72_v21 }
  0xcc   :  { %303 = vpow2.f32 %v116_v20 }
  0xcf   :  { %v206_v18 = vpop.xlane.xlu1 %205 }
  0xd0   :  { %v207_v23 = vsub.f32 %v203_v8, %v206_v18 }
  0xd1   :  { %v302_v22 = vpop.eup %301 }
  0xd2   :  { %v164_v24 = vsel %vm65_vm0, %v302_v22, 0.0  ;;  %v208_v25 = vmul.f32 1.442695, %v207_v23 }
  0xd3   :  { %165 = vadd.xlane.f32.xlu0 %v164_v24 }
  0xd4   :  { %305 = vpow2.f32 %v208_v25 }
  0xd9   :  { %v304_v26 = vpop.eup %303 }
  0xda   :  { %v118_v27 = vsel %vm65_vm0, %v304_v26, 0.0 }
  0xdb   :  { %119 = vadd.xlane.f32.xlu1 %v118_v27 }
  0xe1   :  { %v306_v28 = vpop.eup %305 }
  0xe2   :  { %v210_v29 = vsel %vm65_vm0, %v306_v28, 0.0 }
  0xe3   :  { %211 = vadd.xlane.f32.xlu1 %v210_v29 }
 0x154   :  { %v74_v30 = vpop.xlane.xlu0 %73 }
 0x155   :  { %307 = vrcp.f32 %v74_v30 }
 0x15c   :  { %v166_v31 = vpop.xlane.xlu0 %165 }
 0x15d   :  { %309 = vrcp.f32 %v166_v31 }
 0x162   :  { %v308_v32 = vpop.eup %307 }
 0x163   :  { %v76_v33 = vmul.f32 %v308_v32, %v300_v19 }
 0x164   :  { %v120_v34 = vpop.xlane.xlu1 %119 }
 0x165   :  { %311 = vrcp.f32 %v120_v34  ;;  %77 = vst [vmem:[#allocation7] sm:$0x1] %v76_v33 }
 0x16a   :  { %v310_v35 = vpop.eup %309 }
 0x16b   :  { %v168_v36 = vmul.f32 %v310_v35, %v302_v22 }
 0x16c   :  { %v212_v37 = vpop.xlane.xlu1 %211 }
 0x16d   :  { %169 = vst [vmem:[#allocation7 + $0x2] sm:$0x1] %v168_v36  ;;  %313 = vrcp.f32 %v212_v37 }
 0x172   :  { %v312_v38 = vpop.eup %311 }
 0x173   :  { %v122_v39 = vmul.f32 %v312_v38, %v304_v26 }
 0x175   :  { %123 = vst [vmem:[#allocation7 + $0x1] sm:$0x1] %v122_v39 }
 0x17a   :  { %v314_v40 = vpop.eup %313 }
 0x17b   :  { %v214_v41 = vmul.f32 %v314_v40, %v306_v28 }
 0x17d   :  { %215 = vst [vmem:[#allocation7 + $0x3] sm:$0x1] %v214_v41 }
 0x17e   :  { %354 = shalt.err (!%p351_p9)
}
 0x17f   :  { %225 = dma.vmem_to_hbm [thread:$0]  %s223_s23, 64, %s474_s2, [#allocation6]  }
 0x180   :  { %367 = dma.done.wait [#allocation6], 64  }
 0x181   :  { %368 = vsyncadd [#allocation6], 4294967232 }
 0x182   :  { %229 = vsyncpa [#allocation5], 1 }
 0x183   :  { %230 = vsyncpa [#allocation6], 1 }

</bundles_post_ra>
